<compile_context>
chip_gen: v6e
topology: v6e:2x2x1
jax: 0.10.0
libtpu: 0.0.40
codegen_flags: <defaults>
</compile_context>

<pallas_src>
import math
from functools import partial

import jax
import jax.numpy as jnp
from jax.experimental import pallas as pl
from jax.experimental.pallas import tpu as pltpu


def _gcn_rank1_kernel(gc1_ref, p_ref, q_ref, w2b2_ref, out_ref):
    """Rank-1-factored 2-layer GCN over the relative-coordinate graph.

    Layout: batch on sublanes, S = H*W on lanes.

    gc1_ref  : (6,)     f32  SMEM  [w1_00, w1_01, w1_10, w1_11, b1_0, b1_1]
    p_ref    : (B, S)   f32  VMEM  position-weight vector (mean over channels)
    q_ref    : (B, 2)   f32  VMEM  q = [sum(dist*p), sum(angle*p)]
    w2b2_ref : (3, 576) f32  VMEM  rows 0-1 = gc2 weight, row 2 = gc2 bias
    out_ref  : (B, 576) f32  VMEM  structure_info at the anchor position
    """
    p = p_ref[...]                                          # (B, S)
    q0 = q_ref[:, 0:1]                                      # (B, 1)
    q1 = q_ref[:, 1:2]                                      # (B, 1)

    # r1 = q @ W1  (gc1 support folded through the rank-1 adjacency p p^T)
    r1_0 = q0 * gc1_ref[0] + q1 * gc1_ref[2]                # (B, 1)
    r1_1 = q0 * gc1_ref[1] + q1 * gc1_ref[3]                # (B, 1)

    # h1 = relu(leaky_relu(p*r1 + b1)) == relu(p*r1 + b1)   (exact)
    # TODO(synk): dropout layers treated as identity (eval semantics); the
    # reference even calls F.dropout with training=True by default.
    h1_0 = jnp.maximum(p * r1_0 + gc1_ref[4], 0.0)          # (B, S)
    h1_1 = jnp.maximum(p * r1_1 + gc1_ref[5], 0.0)          # (B, S)

    # v = h1^T p  (two scalars per batch; lane reductions over S)
    v0 = jnp.sum(p * h1_0, axis=-1, keepdims=True)          # (B, 1)
    v1 = jnp.sum(p * h1_1, axis=-1, keepdims=True)          # (B, 1)

    # p at the anchor == max(p) since the anchor is argmax(p)
    p_anchor = jnp.max(p, axis=-1, keepdims=True)           # (B, 1)

    # Anchor row of GCN layer 2: leaky_relu(p_anchor * (v @ W2) + b2)
    r2 = v0 * w2b2_ref[0:1, :] + v1 * w2b2_ref[1:2, :]      # (B, 576)
    pre = p_anchor * r2 + w2b2_ref[2:3, :]                  # (B, 576)
    out_ref[...] = jnp.maximum(pre, 0.2 * pre)              # LeakyReLU(0.2)


def init_part_structure_params(key):
    """GraphConvolution.reset_parameters: uniform(-1/sqrt(out_feat), +...)."""
    k1, k2, k3, k4 = jax.random.split(key, 4)
    stdv1 = 1.0 / math.sqrt(2.0)     # gc1: GraphConvolution(2, 2)
    stdv2 = 1.0 / math.sqrt(576.0)   # gc2: GraphConvolution(2, 576)
    w1 = jax.random.uniform(k1, (2, 2), jnp.float32, -stdv1, stdv1)
    b1 = jax.random.uniform(k2, (2,), jnp.float32, -stdv1, stdv1)
    w2 = jax.random.uniform(k3, (2, 576), jnp.float32, -stdv2, stdv2)
    b2 = jax.random.uniform(k4, (576,), jnp.float32, -stdv2, stdv2)
    return {
        "w1": w1, "b1": b1, "w2": w2, "b2": b2,
        # Kernel-consolidated views, built once at init (not per call):
        "gc1": jnp.concatenate([w1.reshape(-1), b1]),            # (6,)
        "w2b2": jnp.concatenate([w2, b2[None, :]], axis=0),      # (3, 576)
    }


@jax.jit
def part_structure_forward(hidden_states, attention_map, params):
    # hidden_states is unused by the reference forward (kept for signature parity).
    del hidden_states
    B, C, H, W = attention_map.shape
    S = H * W
    size = float(H)

    # ---- RelativeCoordPredictor prep (small XLA fusions, jitted with kernel) ----
    p = jnp.mean(attention_map.reshape(B, C, S), axis=1)            # (B, S)
    idx = jnp.argmax(p, axis=-1)                                    # (B,)

    iota = jnp.arange(S, dtype=jnp.int32)
    rows = (iota // W).astype(jnp.float32)                          # (S,)
    cols = (iota % W).astype(jnp.float32)                           # (S,)
    a_row = (idx // W).astype(jnp.float32)[:, None]                 # (B, 1)
    a_col = (idx % W).astype(jnp.float32)[:, None]                  # (B, 1)
    dx = (rows[None, :] - a_row) / size                             # (B, S)
    dy = (cols[None, :] - a_col) / size                             # (B, S)
    dist = jnp.sqrt(dx * dx + dy * dy)                              # (B, S)
    # TODO(synk): atan2 kept in plain JAX (no robust Pallas-TPU lowering for it).
    angle = (jnp.arctan2(dy, dx) / jnp.pi + 1.0) / 2.0              # (B, S)

    # dist/angle only ever enter as q = coord^T p; reduce here (fuses with above).
    q = jnp.stack([jnp.sum(dist * p, axis=-1),
                   jnp.sum(angle * p, axis=-1)], axis=-1)           # (B, 2)

    nclass = params["w2b2"].shape[1]
    out = pl.pallas_call(
        _gcn_rank1_kernel,
        out_shape=jax.ShapeDtypeStruct((B, nclass), jnp.float32),
        in_specs=[
            pl.BlockSpec(memory_space=pltpu.MemorySpace.SMEM),      # gc1  (6,)
            pl.BlockSpec(memory_space=pltpu.MemorySpace.VMEM),      # p    (B, S)
            pl.BlockSpec(memory_space=pltpu.MemorySpace.VMEM),      # q    (B, 2)
            pl.BlockSpec(memory_space=pltpu.MemorySpace.VMEM),      # w2b2 (3, 576)
        ],
        out_specs=pl.BlockSpec(memory_space=pltpu.MemorySpace.VMEM),
    )(params["gc1"].astype(jnp.float32), p, q, params["w2b2"].astype(jnp.float32))

    return out                                                      # (B, 576)


def part_structure_reference(attention_map, params):
    """Pure-JAX dense reference of the PyTorch forward (eval-mode dropout)."""
    B, C, H, W = attention_map.shape
    S = H * W
    hi = jax.lax.Precision.HIGHEST
    x = attention_map.reshape(B, C, S).transpose(0, 2, 1)
    p = jnp.mean(x, axis=-1)
    idx = jnp.argmax(p, axis=-1)
    rows = (jnp.arange(S) // W).astype(jnp.float32)
    cols = (jnp.arange(S) % W).astype(jnp.float32)
    label = jnp.stack([rows, cols], axis=-1)
    anchor = label[idx]
    rel = (label[None] - anchor[:, None, :]) / float(H)
    dist = jnp.sqrt(jnp.sum(rel * rel, axis=-1))
    angle = (jnp.arctan2(rel[..., 1], rel[..., 0]) / jnp.pi + 1.0) / 2.0
    coord = jnp.stack([dist, angle], axis=-1)
    adj = p[:, :, None] * p[:, None, :]

    def leaky(v):
        return jnp.where(v >= 0.0, v, 0.2 * v)

    sup1 = jnp.einsum("bsi,ij->bsj", coord, params["w1"], precision=hi)
    h1 = jnp.maximum(leaky(jnp.einsum("bst,btj->bsj", adj, sup1, precision=hi)
                           + params["b1"]), 0.0)
    sup2 = jnp.einsum("bsi,ij->bsj", h1, params["w2"], precision=hi)
    h2 = leaky(jnp.einsum("bst,btj->bsj", adj, sup2, precision=hi) + params["b2"])
    # NOTE: anchor_index = row*H + col matches the PyTorch module; it equals the
    # flat index row*W + col only because H == W (latent bug inherited from spec).
    anchor_index = (anchor[:, 0] * H + anchor[:, 1]).astype(jnp.int32)
    return jnp.take_along_axis(h2, anchor_index[:, None, None], axis=1)[:, 0, :]


if __name__ == "__main__":
    key = jax.random.PRNGKey(0)
    k_hidden, k_attn, k_param = jax.random.split(key, 3)

    B, C, H, W = 2, 4, 16, 16
    attention_map = jax.random.uniform(k_attn, (B, C, H, W), dtype=jnp.float32)
    hidden_states = jax.random.normal(k_hidden, (B, H * W, 576), dtype=jnp.float32)  # unused
    params = init_part_structure_params(k_param)

    out = part_structure_forward(hidden_states, attention_map, params)
    out = jax.block_until_ready(out)
    assert out.shape == (B, 576), out.shape

    ref = part_structure_reference(attention_map, params)
    if not bool(jnp.allclose(out, ref, atol=1e-2, rtol=1e-4)):
        err = float(jnp.max(jnp.abs(out - ref)))
        raise AssertionError(f"kernel mismatch vs reference, max abs err = {err}")

    print("KERNEL_OK")
</pallas_src>

<mosaic_0001>
module attributes {stable_mosaic.version = 11 : i64} {
  func.func @_gcn_rank1_kernel(%arg0: memref<6xf32, #tpu.memory_space<smem>>, %arg1: memref<2x256xf32, #tpu.memory_space<vmem>>, %arg2: memref<2x2xf32, #tpu.memory_space<vmem>>, %arg3: memref<3x576xf32, #tpu.memory_space<vmem>>, %arg4: memref<2x576xf32, #tpu.memory_space<vmem>>) attributes {dimension_semantics = [], scalar_prefetch = 0 : i64, scratch_operands = 0 : i64, tpu.core_type = #tpu.core_type<tc>} {
    %c0 = arith.constant 0 : index
    %c0_0 = arith.constant 0 : index
    %0 = vector.load %arg1[%c0, %c0_0] : memref<2x256xf32, #tpu.memory_space<vmem>>, vector<2x256xf32>
    %c0_1 = arith.constant 0 : index
    %c0_2 = arith.constant 0 : index
    %1 = vector.load %arg2[%c0_1, %c0_2] : memref<2x2xf32, #tpu.memory_space<vmem>>, vector<2x1xf32>
    %c0_3 = arith.constant 0 : index
    %c1 = arith.constant 1 : index
    %2 = vector.load %arg2[%c0_3, %c1] : memref<2x2xf32, #tpu.memory_space<vmem>>, vector<2x1xf32>
    %c0_4 = arith.constant 0 : index
    %3 = memref.load %arg0[%c0_4] : memref<6xf32, #tpu.memory_space<smem>>
    %4 = vector.broadcast %3 : f32 to vector<2x1xf32>
    %5 = arith.mulf %1, %4 : vector<2x1xf32>
    %c2 = arith.constant 2 : index
    %6 = memref.load %arg0[%c2] : memref<6xf32, #tpu.memory_space<smem>>
    %7 = vector.broadcast %6 : f32 to vector<2x1xf32>
    %8 = arith.mulf %2, %7 : vector<2x1xf32>
    %9 = arith.addf %5, %8 : vector<2x1xf32>
    %c1_5 = arith.constant 1 : index
    %10 = memref.load %arg0[%c1_5] : memref<6xf32, #tpu.memory_space<smem>>
    %11 = vector.broadcast %10 : f32 to vector<2x1xf32>
    %12 = arith.mulf %1, %11 : vector<2x1xf32>
    %c3 = arith.constant 3 : index
    %13 = memref.load %arg0[%c3] : memref<6xf32, #tpu.memory_space<smem>>
    %14 = vector.broadcast %13 : f32 to vector<2x1xf32>
    %15 = arith.mulf %2, %14 : vector<2x1xf32>
    %16 = arith.addf %12, %15 : vector<2x1xf32>
    %17 = vector.broadcast %9 : vector<2x1xf32> to vector<2x256xf32>
    %18 = arith.mulf %0, %17 : vector<2x256xf32>
    %c4 = arith.constant 4 : index
    %19 = memref.load %arg0[%c4] : memref<6xf32, #tpu.memory_space<smem>>
    %20 = vector.broadcast %19 : f32 to vector<2x256xf32>
    %21 = arith.addf %18, %20 : vector<2x256xf32>
    %cst = arith.constant 0.000000e+00 : f32
    %22 = vector.broadcast %cst : f32 to vector<2x256xf32>
    %23 = arith.maximumf %21, %22 : vector<2x256xf32>
    %24 = vector.broadcast %16 : vector<2x1xf32> to vector<2x256xf32>
    %25 = arith.mulf %0, %24 : vector<2x256xf32>
    %c5 = arith.constant 5 : index
    %26 = memref.load %arg0[%c5] : memref<6xf32, #tpu.memory_space<smem>>
    %27 = vector.broadcast %26 : f32 to vector<2x256xf32>
    %28 = arith.addf %25, %27 : vector<2x256xf32>
    %cst_6 = arith.constant 0.000000e+00 : f32
    %29 = vector.broadcast %cst_6 : f32 to vector<2x256xf32>
    %30 = arith.maximumf %28, %29 : vector<2x256xf32>
    %31 = arith.mulf %0, %23 : vector<2x256xf32>
    %cst_7 = arith.constant dense<0.000000e+00> : vector<2xf32>
    %32 = vector.multi_reduction <add>, %31, %cst_7 [1] : vector<2x256xf32> to vector<2xf32>
    %33 = vector.shape_cast %32 : vector<2xf32> to vector<2x1xf32>
    %34 = arith.mulf %0, %30 : vector<2x256xf32>
    %cst_8 = arith.constant dense<0.000000e+00> : vector<2xf32>
    %35 = vector.multi_reduction <add>, %34, %cst_8 [1] : vector<2x256xf32> to vector<2xf32>
    %36 = vector.shape_cast %35 : vector<2xf32> to vector<2x1xf32>
    %cst_9 = arith.constant dense<0xFF800000> : vector<2xf32>
    %37 = vector.multi_reduction <maximumf>, %0, %cst_9 [1] : vector<2x256xf32> to vector<2xf32>
    %38 = vector.shape_cast %37 : vector<2xf32> to vector<2x1xf32>
    %c0_10 = arith.constant 0 : index
    %c0_11 = arith.constant 0 : index
    %39 = vector.load %arg3[%c0_10, %c0_11] : memref<3x576xf32, #tpu.memory_space<vmem>>, vector<1x576xf32>
    %40 = vector.broadcast %33 : vector<2x1xf32> to vector<2x576xf32>
    %41 = vector.broadcast %39 : vector<1x576xf32> to vector<2x576xf32>
    %42 = arith.mulf %40, %41 : vector<2x576xf32>
    %c1_12 = arith.constant 1 : index
    %c0_13 = arith.constant 0 : index
    %43 = vector.load %arg3[%c1_12, %c0_13] : memref<3x576xf32, #tpu.memory_space<vmem>>, vector<1x576xf32>
    %44 = vector.broadcast %36 : vector<2x1xf32> to vector<2x576xf32>
    %45 = vector.broadcast %43 : vector<1x576xf32> to vector<2x576xf32>
    %46 = arith.mulf %44, %45 : vector<2x576xf32>
    %47 = arith.addf %42, %46 : vector<2x576xf32>
    %48 = vector.broadcast %38 : vector<2x1xf32> to vector<2x576xf32>
    %49 = arith.mulf %48, %47 : vector<2x576xf32>
    %c2_14 = arith.constant 2 : index
    %c0_15 = arith.constant 0 : index
    %50 = vector.load %arg3[%c2_14, %c0_15] : memref<3x576xf32, #tpu.memory_space<vmem>>, vector<1x576xf32>
    %51 = vector.broadcast %50 : vector<1x576xf32> to vector<2x576xf32>
    %52 = arith.addf %49, %51 : vector<2x576xf32>
    %cst_16 = arith.constant 2.000000e-01 : f32
    %53 = vector.broadcast %cst_16 : f32 to vector<2x576xf32>
    %54 = arith.mulf %53, %52 : vector<2x576xf32>
    %55 = arith.maximumf %52, %54 : vector<2x576xf32>
    %c0_17 = arith.constant 0 : index
    %c0_18 = arith.constant 0 : index
    %56 = vector.load %arg4[%c0_17, %c0_18] : memref<2x576xf32, #tpu.memory_space<vmem>>, vector<2x576xf32>
    tpu.vector_store %arg4[%c0_17, %c0_18], %55 {strides = array<i32>} : memref<2x576xf32, #tpu.memory_space<vmem>>, vector<2x576xf32>,
    return
  }
}

</mosaic_0001>

<bundles_post_ra>
// kernel: part_structure_forward.1
= control target key start
LH: loop header
LB: loop body
LE: loop exit
PB: predicated region body
PF: predicated region fallthrough
CT: control target
= control target key end

     0   :  { %9 = vsyncpa [#allocation4], 0  ;;  %s418_s0 = inlined_call_operand.vmem [shape: f32[6], index: 0, kind: input, shape index: {}]   ;;  %s419_s1 = inlined_call_operand.vmem [shape: f32[2,256], index: 1, kind: input, shape index: {}]   ;;  %s420_s2 = inlined_call_operand.vmem [shape: f32[2,2], index: 2, kind: input, shape index: {}]   ;;  %s421_s3 = inlined_call_operand.vmem [shape: f32[3,576], index: 3, kind: input, shape index: {}]   ;;  %s422_s4 = inlined_call_operand.hbm [shape: f32[2,576], index: 4, kind: output, shape index: {}]  }
   0x1   :  { %10 = vsyncpa [#allocation3], 0  ;;  %s17_s17 = sshll.u32 %s418_s0, 4  ;;  %s18_s17 = int_to_ptr.vmem [resolvable:$true] %s17_s17 }
   0x2   :  { %s322_s18 = scalar_lea.vmem %s18_s17, 16  ;;  %p327_p1 = scmp.lt.s32.totalorder %s18_s17, %s18_s17 }
   0x3   :  { %p323_p0 = scmp.ne.s32.totalorder %s18_s17, %s322_s18  ;;  %p328_p2 = scmp.lt.s32.totalorder %s322_s18, %s322_s18 }
   0x5   :  { %p329_p3 = por %p328_p2, %p327_p1 }
   0x7   :  { %p330_p4 = pnand %p329_p3, %p323_p0 }
   0x9   :  { %333 = shalt.err (!%p330_p4)
}
   0xa   :  { %s358_s19 = smov [#allocation2]  }
   0xb   :  { %20 = dma.vmem_to_smem %s18_s17, 16, %s358_s19, [#allocation4]  }
   0xc   :  { %354 = dma.done.wait [#allocation4], 16  }
   0xd   :  { %355 = vsyncadd [#allocation4], 4294967280 }
   0xe   :  { %30 = sfence }
   0xf   :  { %s307_s20 = sld [smem:[#allocation2 + $0x2]]  ;;  %v359_v0 = vmov 0   ;;  %v32_v1 = vld [vmem:[%s420_s2] sm:$0x3]  ;;  %s360_s23 = smov 127   ;;  %v62_v16 = vlaneseq  ;;  %vm101_vm0 = vcmask 1041408  }
  0x10   :  { %s309_s21 = sld [smem:[#allocation2 + $0x3]]  ;;  %320 = vset.pattern.permute.xlu1 %v359_v0  ;;  %321 = vset.pattern.permute.xlu0 %v359_v0  ;;  %v361_v14 = vmov 269488144   ;;  %v362_v20 = vmov 1983009808   ;;  %vm290_vm1 = vcmask 517120  }
  0x11   :  { %s33_s24 = sld [smem:[#allocation2]]  ;;  %v60_v15 = vunpack.c.l.s4 %v361_v14  ;;  %v63_v18 = vshrl.u32 %v62_v16, 7  ;;  %v92_v21 = vunpack.c.l.s4 %v362_v20  ;;  %v31_v23 = vld [vmem:[%s419_s1] sm:$0xf] }
  0x12   :  { %s308_s25 = sld [smem:[#allocation2 + $0x1]]  ;;  %v140_v58 = vld [vmem:[%s421_s3] ss:$4 sm:$0x1f] }
  0x13   :  { %v61_v17 = vunpack.c.0.s8 %v60_v15  ;;  %s310_s2 = sld [smem:[#allocation2 + $0x4]]  ;;  %v93_v25 = vunpack.c.0.s8 %v92_v21  ;;  %v144_v54 = vsub.s32 0, %v63_v18  ;;  %v148_v55 = vsub.s32 1, %v63_v18  ;;  %v312_v60 = vld [vmem:[%s421_s3 + $0x1] ss:$4 sm:$0x1f] }
  0x14   :  { %s311_s26 = sld [smem:[#allocation2 + $0x5]]  ;;  %v152_v56 = vsub.s32 2, %v63_v18  ;;  %v156_v57 = vsub.s32 3, %v63_v18  ;;  %v160_v59 = vsub.s32 4, %v63_v18 }
  0x15   :  { %v37_v2 = vstv %s307_s20  ;;  %v64_v19 = vsub.s32 %v61_v17, %v63_v18  ;;  %v398_v31 = vsub.s32 %v93_v25, %v63_v18  ;;  %v145_v61 = vrot.slane %v140_v58, %v144_v54 }
  0x16   :  { %v38_v3 = vmul.f32 %v37_v2, %v32_v1  ;;  %v48_v4 = vstv %s309_s21  ;;  %v149_v62 = vrot.slane %v140_v58, %v148_v55  ;;  %v153_v63 = vrot.slane %v140_v58, %v152_v56 }
  0x17   :  { %v49_v5 = vmul.f32 %v48_v4, %v32_v1  ;;  %v34_v6 = vstv %s33_s24  ;;  %v131_v35 = vrot.slane %v31_v23, %v398_v31  ;;  %v157_v0 = vrot.slane %v140_v58, %v156_v57 }
  0x18   :  { %40 = vrot.lane.b32.xlu0 %v38_v3, %s360_s23  ;;  %v35_v7 = vmul.f32 %v34_v6, %v32_v1  ;;  %v45_v8 = vstv %s308_s25  ;;  %v178_v3 = vrot.slane %v312_v60, %v144_v54  ;;  %v182_v4 = vrot.slane %v312_v60, %v148_v55 }
  0x19   :  { %v46_v11 = vmul.f32 %v45_v8, %v32_v1  ;;  %v69_v26 = vstv %s310_s2  ;;  %v132_v40 = vcombine.high %v131_v35, %v131_v35  ;;  %v135_v43 = vsel %vm101_vm0, %v131_v35, -inf  ;;  %v313_v1 = vld [vmem:[%s421_s3 + $0x2] ss:$4 sm:$0x1f]  ;;  %s363_s3 = smov [#allocation5]  }
  0x1a   :  { %v86_v32 = vstv %s311_s26  ;;  %v190_v6 = vrot.slane %v312_v60, %v156_v57  ;;  %v194_v8 = vrot.slane %v312_v60, %v160_v59  ;;  %s298_s8 = sshll.u32 %s363_s3, 4  ;;  %s299_s8 = int_to_ptr.vmem [resolvable:$true] %s298_s8 }
  0x1b   :  { %v136_v47 = vsel %vm101_vm0, %v132_v40, -inf  ;;  %s334_s9 = scalar_lea.vmem %s299_s8, 160  ;;  %p339_p6 = scmp.lt.s32.totalorder %s299_s8, %s299_s8 }
  0x1c   :  { %51 = vrot.lane.b32.xlu0 %v49_v5, %s360_s23  ;;  %v137_v50 = vmax.f32 %v135_v43, %v136_v47  ;;  %v186_v5 = vrot.slane %v312_v60, %v152_v56  ;;  %p335_p5 = scmp.ne.s32.totalorder %s299_s8, %s334_s9  ;;  %p340_p7 = scmp.lt.s32.totalorder %s334_s9, %s334_s9 }
  0x1e   :  { %p341_p8 = por %p340_p7, %p339_p6 }
  0x20   :  { %p342_p9 = pnand %p341_p8, %p335_p5 }
  0x8a   :  { %v41_v9 = vpop.permute.xlu0 %40 }
  0x8b   :  { %v43_v10 = vadd.f32 %v41_v9, %v35_v7  ;;  %v161_v7 = vrot.slane %v140_v58, %v160_v59  ;;  %v221_v9 = vrot.slane %v313_v1, %v144_v54 }
  0x8d   :  { %57 = vperm.xlu1 %320, %v43_v10   ;;  %v225_v10 = vrot.slane %v313_v1, %v148_v55 }
  0x8e   :  { %v52_v12 = vpop.permute.xlu0 %51 }
  0x8f   :  { %v54_v13 = vadd.f32 %v52_v12, %v46_v11 }
  0x91   :  { %74 = vperm.xlu1 %320, %v54_v13  }
 0x108   :  { %v58_v22 = vpop.permute.xlu1 %57 }
 0x109   :  { %v65_v24 = vrot.slane %v58_v22, %v64_v19  ;;  %v229_v22 = vrot.slane %v313_v1, %v152_v56 }
 0x10b   :  { %v67_v27 = vmul.f32 %v65_v24, %v31_v23 }
 0x10c   :  { %v75_v28 = vpop.permute.xlu1 %74 }
 0x10d   :  { %v70_v29 = vadd.f32 %v69_v26, %v67_v27  ;;  %v82_v30 = vrot.slane %v75_v28, %v64_v19 }
 0x10f   :  { %v71_v33 = vmax.f32 %v70_v29, 0.0  ;;  %v84_v34 = vmul.f32 %v82_v30, %v31_v23  ;;  %v237_v30 = vrot.slane %v313_v1, %v160_v59 }
 0x111   :  { %v87_v36 = vadd.f32 %v86_v32, %v84_v34  ;;  %v89_v37 = vmul.f32 %v71_v33, %v31_v23 }
 0x113   :  { %v88_v38 = vmax.f32 %v87_v36, 0.0  ;;  %v97_v39 = vrot.slane %v89_v37, %v398_v31 }
 0x115   :  { %v98_v41 = vcombine.high %v97_v39, %v97_v39  ;;  %v107_v42 = vmul.f32 %v88_v38, %v31_v23  ;;  %v102_v44 = vsel %vm101_vm0, %v97_v39, 0.0  ;;  %v233_v23 = vrot.slane %v313_v1, %v156_v57 }
 0x117   :  { %v103_v45 = vsel %vm101_vm0, %v98_v41, 0.0  ;;  %v115_v46 = vrot.slane %v107_v42, %v398_v31 }
 0x118   :  { %v104_v48 = vadd.f32 %v103_v45, %v102_v44 }
 0x119   :  { %v116_v49 = vcombine.high %v115_v46, %v115_v46  ;;  %v119_v51 = vsel %vm101_vm0, %v115_v46, 0.0 }
 0x11a   :  { %105 = vadd.xlane.f32.xlu0 %v104_v48 }
 0x11b   :  { %v120_v52 = vsel %vm101_vm0, %v116_v49, 0.0 }
 0x11c   :  { %v121_v53 = vadd.f32 %v120_v52, %v119_v51 }
 0x11e   :  { %122 = vadd.xlane.f32.xlu1 %v121_v53  ;;  %138 = vmax.xlane.f32.xlu0 %v137_v50 }
 0x1a3   :  { %v106_v2 = vpop.xlane.xlu0 %105 }
 0x1a4   :  { %v167_v11 = vmul.f32 %v145_v61, %v106_v2  ;;  %v168_v12 = vmul.f32 %v149_v62, %v106_v2  ;;  %v169_v13 = vmul.f32 %v153_v63, %v106_v2  ;;  %v170_v14 = vmul.f32 %v157_v0, %v106_v2 }
 0x1a5   :  { %v171_v20 = vmul.f32 %v161_v7, %v106_v2 }
 0x1a7   :  { %v123_v15 = vpop.xlane.xlu1 %122  ;;  %v139_v24 = vpop.xlane.xlu0 %138 }
 0x1a8   :  { %v200_v16 = vmul.f32 %v178_v3, %v123_v15  ;;  %v201_v17 = vmul.f32 %v182_v4, %v123_v15  ;;  %v202_v18 = vmul.f32 %v186_v5, %v123_v15  ;;  %v203_v19 = vmul.f32 %v190_v6, %v123_v15 }
 0x1a9   :  { %v204_v21 = vmul.f32 %v194_v8, %v123_v15 }
 0x1aa   :  { %v205_v25 = vadd.f32 %v200_v16, %v167_v11  ;;  %v206_v26 = vadd.f32 %v201_v17, %v168_v12  ;;  %v207_v27 = vadd.f32 %v202_v18, %v169_v13  ;;  %v208_v28 = vadd.f32 %v203_v19, %v170_v14 }
 0x1ab   :  { %v209_v29 = vadd.f32 %v204_v21, %v171_v20 }
 0x1ac   :  { %v210_v32 = vmul.f32 %v205_v25, %v139_v24  ;;  %v211_v33 = vmul.f32 %v206_v26, %v139_v24  ;;  %v212_v34 = vmul.f32 %v207_v27, %v139_v24  ;;  %v213_v35 = vmul.f32 %v208_v28, %v139_v24 }
 0x1ad   :  { %v214_v36 = vmul.f32 %v209_v29, %v139_v24 }
 0x1ae   :  { %v243_v37 = vadd.f32 %v221_v9, %v210_v32  ;;  %v244_v38 = vadd.f32 %v225_v10, %v211_v33  ;;  %v245_v39 = vadd.f32 %v229_v22, %v212_v34  ;;  %v246_v40 = vadd.f32 %v233_v23, %v213_v35 }
 0x1af   :  { %v247_v41 = vadd.f32 %v237_v30, %v214_v36 }
 0x1b0   :  { %v248_v42 = vmul.f32 0.2, %v243_v37  ;;  %v249_v43 = vmul.f32 0.2, %v244_v38  ;;  %v250_v44 = vmul.f32 0.2, %v245_v39 }
 0x1b1   :  { %v251_v45 = vmul.f32 0.2, %v246_v40  ;;  %v252_v46 = vmul.f32 0.2, %v247_v41 }
 0x1b2   :  { %v253_v47 = vmax.f32 %v243_v37, %v248_v42  ;;  %v254_v48 = vmax.f32 %v244_v38, %v249_v43  ;;  %v255_v49 = vmax.f32 %v245_v39, %v250_v44 }
 0x1b3   :  { %v256_v50 = vmax.f32 %v246_v40, %v251_v45  ;;  %v257_v51 = vmax.f32 %v247_v41, %v252_v46 }
 0x1b4   :  { %v263_v52 = vcombine.low %v253_v47, %v254_v48 }
 0x1b5   :  { %v264_v53 = vcombine.low %v255_v49, %v256_v50  ;;  %v286_v54 = vrot.slane %v257_v51, %v398_v31 }
 0x1b6   :  { %v271_v55 = vrot.slane %v263_v52, %v398_v31 }
 0x1b7   :  { %v278_v56 = vrot.slane %v264_v53, %v398_v31  ;;  %291 = vst.msk [vmem:[#allocation5 + $0x8] sm:$0x3] %vm290_vm1, %v286_v54 }
 0x1b9   :  { %v279_v57 = vcombine.low %v271_v55, %v278_v56 }
 0x1bb   :  { %289 = vst [vmem:[#allocation5] sm:$0xff] %v279_v57 }
 0x1bc   :  { %345 = shalt.err (!%p342_p9)
}
 0x1bd   :  { %301 = dma.vmem_to_hbm [thread:$0]  %s299_s8, 160, %s422_s4, [#allocation3]  }
 0x1be   :  { %356 = dma.done.wait [#allocation3], 160  }
 0x1bf   :  { %357 = vsyncadd [#allocation3], 4294967136 }
 0x1c0   :  { %305 = vsyncpa [#allocation3], 1 }
 0x1c1   :  { %306 = vsyncpa [#allocation4], 1 }

</bundles_post_ra>
